<compile_context>
chip_gen: v6e
topology: v6e:2x2x1
jax: 0.10.0
libtpu: 0.0.40
codegen_flags: <defaults>
</compile_context>

<pallas_src>
import math
import functools

import jax
import jax.numpy as jnp
from jax.experimental import pallas as pl
from jax.experimental.pallas import tpu as pltpu

EPS = 1e-5   # BatchNorm1d default eps
LANE = 128   # TPU lane width


def _round_up(n, m=LANE):
    return ((n + m - 1) // m) * m


def positional_encoding(seq_len, d_model):
    position = jnp.arange(seq_len, dtype=jnp.float32)[:, None]
    div_term = jnp.exp(jnp.arange(0, d_model, 2, dtype=jnp.float32)
                       * -(math.log(10000.0) / d_model))
    ang = position * div_term
    pe = jnp.zeros((seq_len, d_model), jnp.float32)
    pe = pe.at[:, 0::2].set(jnp.sin(ang))
    pe = pe.at[:, 1::2].set(jnp.cos(ang))
    return pe


def self_attention_kernel(x_ref, pe_ref, kqv_w_ref, kqv_b_ref, g_w_ref, g_b_ref,
                          w1_ref, b1_ref, w2_ref, b2_ref, out_ref, x_scr,
                          *, emb, emb_pad, batch, seq, mxu_dtype):
    l = pl.program_id(0)
    B, S, E, Ep = batch, seq, emb, emb_pad
    BS = B * S
    inv_n = 1.0 / float(BS)

    # ---- grid step 0: embedding + positional encoding -> lane-dense scratch.
    # x/pe arrive with their logical (E=32) lane width; padding to Ep=128
    # happens here in VMEM, so the HBM activation DMA is not inflated 4x.
    @pl.when(l == 0)
    def _():
        xe = (x_ref[...] + pe_ref[...][None, :, :]).reshape(BS, E)
        x_scr[...] = jnp.zeros((BS, Ep), jnp.float32)
        x_scr[:, :E] = xe                      # masked store, runs once

    x = x_scr[...]                             # (BS, Ep) fp32, padded lanes = 0

    # ---- BatchNorm1d(E, affine=False): training-mode batch stats over (B, S)
    # per channel, biased variance.  Two passes (mean, then centered second
    # moment) to avoid E[x^2] - m^2 cancellation; both reductions run as
    # (1, BS) @ (BS, Ep) MXU matmuls instead of cross-sublane XLU reductions.
    ones_row = jnp.ones((1, BS), jnp.float32)
    mean = jnp.dot(ones_row, x, preferred_element_type=jnp.float32) * inv_n
    xc = x - mean
    var = jnp.dot(ones_row, xc * xc, preferred_element_type=jnp.float32) * inv_n
    xn = xc * jax.lax.rsqrt(var + EPS)         # padded lanes stay exactly 0

    # ---- fused k,q,v projection: one (BS, Ep) @ (Ep, 3Ep) MXU matmul.
    # Weights are pre-cast to mxu_dtype (bf16) in prepare_params; activations
    # are cast here; accumulation stays fp32.
    y = jnp.dot(xn.astype(mxu_dtype), kqv_w_ref[...],
                preferred_element_type=jnp.float32) + kqv_b_ref[...]
    k = y[:, :Ep].reshape(B, S, Ep)
    q = y[:, Ep:2 * Ep].reshape(B, S, Ep)
    v = y[:, 2 * Ep:3 * Ep].reshape(B, S, Ep)

    # ---- attention: softmax(q @ k^T, dim=-1) @ v (no 1/sqrt(E) scaling,
    # matching the reference).  The (B,S,S) score tile is lane-sparse at S=8;
    # fine for the toy shape.
    # TODO(synk): for non-toy S, tile the kv axis to >=128 and switch to an
    # online-softmax (flash-style) accumulation in VMEM scratch so score tiles
    # are lane-dense and the S^2 fp32 footprint stays inside v7x's 64 MiB VMEM.
    # TODO(synk): for large B*S, add an M=B*S grid axis ("parallel", >=256-row
    # tiles on v6e/v7x) with a separate full-batch BN-stats pass so both v7x
    # TensorCores are used.
    s = jnp.einsum('bqe,bke->bqk', q.astype(mxu_dtype), k.astype(mxu_dtype),
                   preferred_element_type=jnp.float32)
    s = s - jnp.max(s, axis=-1, keepdims=True)
    p = jnp.exp(s)
    # approx reciprocal (EUP): ~1e-3 relative error in the softmax denominator
    # vs exact division — acceptable under the ~1e-2 comparison tolerance.
    a = p * pl.reciprocal(jnp.sum(p, axis=-1, keepdims=True), approx=True)
    f = jnp.einsum('bqk,bke->bqe', a.astype(mxu_dtype), v.astype(mxu_dtype),
                   preferred_element_type=jnp.float32).reshape(BS, Ep)

    # ---- residual (pre-norm x) + output projection + ReLU
    z = jnp.dot((x + f).astype(mxu_dtype), g_w_ref[...],
                preferred_element_type=jnp.float32) + g_b_ref[...]
    x_new = jnp.maximum(z, 0.0)
    x_scr[...] = x_new                         # carry to the next grid step

    # ---- last layer: mean-pool over sequence + ReLU MLP head
    # (out_layer is never used in the reference forward).
    @pl.when(l == pl.num_programs(0) - 1)
    def _():
        # mean over seq as a (B, BS) @ (BS, Ep) MXU matmul — no cross-sublane
        # XLU reduction and no (B,S,Ep) reshape copy.
        row = jax.lax.broadcasted_iota(jnp.int32, (B, BS), 0)
        col = jax.lax.broadcasted_iota(jnp.int32, (B, BS), 1)
        in_b = jnp.logical_and(col >= row * S, col < (row + 1) * S)
        pool = jnp.where(in_b, 1.0 / S, 0.0)
        h = jnp.dot(pool, x_new, preferred_element_type=jnp.float32)   # (B, Ep)
        h = jnp.maximum(
            jnp.dot(h.astype(mxu_dtype), w1_ref[...],
                    preferred_element_type=jnp.float32) + b1_ref[...], 0.0)
        h = jnp.maximum(
            jnp.dot(h.astype(mxu_dtype), w2_ref[...],
                    preferred_element_type=jnp.float32) + b2_ref[...], 0.0)
        out_ref[...] = h


def init_params(key, vocab, emb, n_layers, hidden):
    ks = jax.random.split(key, 8)
    scale = 1.0 / math.sqrt(emb)
    params = {
        'embeddings': jax.random.normal(ks[0], (vocab, emb), jnp.float32),
        'kqv_w': jax.random.uniform(ks[1], (n_layers, emb, 3 * emb),
                                    jnp.float32, -scale, scale),
        'kqv_b': jax.random.uniform(ks[2], (n_layers, 3 * emb),
                                    jnp.float32, -scale, scale),
        'g_w': jax.random.uniform(ks[3], (n_layers, emb, emb),
                                  jnp.float32, -scale, scale),
        'g_b': jax.random.uniform(ks[4], (n_layers, emb),
                                  jnp.float32, -scale, scale),
        'w1': jax.random.uniform(ks[5], (emb, hidden[0]),
                                 jnp.float32, -scale, scale),
        'b1': jnp.zeros((1, hidden[0]), jnp.float32),
        'w2': jax.random.uniform(ks[6], (hidden[0], hidden[1]), jnp.float32,
                                 -1.0 / math.sqrt(hidden[0]),
                                 1.0 / math.sqrt(hidden[0])),
        'b2': jnp.zeros((1, hidden[1]), jnp.float32),
    }
    return params


def prepare_params(params, *, n_layers, emb, mxu_dtype=jnp.bfloat16):
    """One-time (hoisted) pad / split / cast of the weights.

    Called once outside the jitted forward so the per-call path pays neither
    the XLA pad ops nor the HBM write+read of padded weight copies.  k/q/v
    weight & bias sections are padded independently so the in-kernel slices
    land on 128-lane boundaries; matmul weights are pre-cast to `mxu_dtype`
    (bf16 by default: bf16-native MXU on v6e/v7x, fp32 accumulation kept in
    the kernel); biases stay fp32 (added post-accumulate).
    """
    E, L = emb, n_layers
    Ep = _round_up(E)

    kqv_w = params['kqv_w'].reshape(L, E, 3, E)
    kqv_w = jnp.pad(kqv_w, ((0, 0), (0, Ep - E), (0, 0), (0, Ep - E)))
    kqv_w = kqv_w.reshape(L, Ep, 3 * Ep).astype(mxu_dtype)
    kqv_b = jnp.pad(params['kqv_b'].reshape(L, 3, E),
                    ((0, 0), (0, 0), (0, Ep - E))).reshape(L, 1, 3 * Ep)
    g_w = jnp.pad(params['g_w'],
                  ((0, 0), (0, Ep - E), (0, Ep - E))).astype(mxu_dtype)
    g_b = jnp.pad(params['g_b'], ((0, 0), (0, Ep - E))).reshape(L, 1, Ep)

    H1 = params['w1'].shape[1]
    H2 = params['w2'].shape[1]
    H1p, H2p = _round_up(H1), _round_up(H2)
    w1 = jnp.pad(params['w1'], ((0, Ep - E), (0, H1p - H1))).astype(mxu_dtype)
    b1 = jnp.pad(params['b1'], ((0, 0), (0, H1p - H1)))
    w2 = jnp.pad(params['w2'], ((0, H1p - H1), (0, H2p - H2))).astype(mxu_dtype)
    b2 = jnp.pad(params['b2'], ((0, 0), (0, H2p - H2)))

    return {
        'embeddings': params['embeddings'],
        'kqv_w': kqv_w, 'kqv_b': kqv_b, 'g_w': g_w, 'g_b': g_b,
        'w1': w1, 'b1': b1, 'w2': w2, 'b2': b2,
    }


def self_attention_forward(tokens, prep, *, n_layers, emb, hidden):
    E, L = emb, n_layers
    Ep = _round_up(E)
    H2 = hidden[-1]
    mxu_dtype = prep['kqv_w'].dtype
    H1p = prep['w1'].shape[1]
    H2p = prep['w2'].shape[1]

    # glue: embedding gather; the PE table is built from static shapes so XLA
    # constant-folds it at compile time (zero per-call cost).
    # TODO(synk): for large B*S, move the gather in-kernel via
    # PrefetchScalarGridSpec + an Element row-gather BlockSpec on the table.
    x = jnp.take(prep['embeddings'], tokens, axis=0).astype(jnp.float32)  # (B,S,E)
    B, S, _ = x.shape
    BS = B * S
    pe = positional_encoding(S, E)                                        # (S,E)

    kernel = functools.partial(self_attention_kernel,
                               emb=E, emb_pad=Ep, batch=B, seq=S,
                               mxu_dtype=mxu_dtype)

    out_p = pl.pallas_call(
        kernel,
        out_shape=jax.ShapeDtypeStruct((B, H2p), jnp.float32),
        grid=(L,),
        in_specs=[
            pl.BlockSpec((B, S, E), lambda l: (0, 0, 0)),           # x (unpadded)
            pl.BlockSpec((S, E), lambda l: (0, 0)),                 # pe (unpadded)
            pl.BlockSpec((None, Ep, 3 * Ep), lambda l: (l, 0, 0)),  # kqv_w[l]
            pl.BlockSpec((None, 1, 3 * Ep), lambda l: (l, 0, 0)),   # kqv_b[l]
            pl.BlockSpec((None, Ep, Ep), lambda l: (l, 0, 0)),      # g_w[l]
            pl.BlockSpec((None, 1, Ep), lambda l: (l, 0, 0)),       # g_b[l]
            pl.BlockSpec((Ep, H1p), lambda l: (0, 0)),              # w1 (resident)
            pl.BlockSpec((1, H1p), lambda l: (0, 0)),               # b1
            pl.BlockSpec((H1p, H2p), lambda l: (0, 0)),             # w2
            pl.BlockSpec((1, H2p), lambda l: (0, 0)),               # b2
        ],
        out_specs=pl.BlockSpec((B, H2p), lambda l: (0, 0)),
        scratch_shapes=[pltpu.VMEM((BS, Ep), jnp.float32)],          # carried x
        compiler_params=pltpu.CompilerParams(
            # layers are sequential (scratch carry) -> "arbitrary"
            dimension_semantics=("arbitrary",),
            # 32 MiB: explicit headroom on v5e (16 MiB scoped default) and
            # safely below v7x's 64 MiB physical VMEM.
            vmem_limit_bytes=32 * 1024 * 1024),
    )(x, pe, prep['kqv_w'], prep['kqv_b'], prep['g_w'], prep['g_b'],
      prep['w1'], prep['b1'], prep['w2'], prep['b2'])
    return out_p[:, :H2]


if __name__ == "__main__":
    B, S = 2, 8
    VOCAB, EMB = 16, 32
    N_LAYERS = 3
    HIDDEN = (32, 32)

    key = jax.random.PRNGKey(0)
    k_tok, k_par = jax.random.split(key)
    tokens = jax.random.randint(k_tok, (B, S), 0, VOCAB, dtype=jnp.int32)
    params = init_params(k_par, VOCAB, EMB, N_LAYERS, HIDDEN)

    # one-time weight pad/cast, hoisted out of the per-call (jitted) path
    prep = prepare_params(params, n_layers=N_LAYERS, emb=EMB)

    forward = jax.jit(functools.partial(self_attention_forward,
                                        n_layers=N_LAYERS, emb=EMB,
                                        hidden=HIDDEN))
    out = forward(tokens, prep)
    jax.block_until_ready(out)
    assert out.shape == (B, HIDDEN[-1])
    print("KERNEL_OK")
</pallas_src>

<mosaic_0001>
module attributes {stable_mosaic.version = 11 : i64} {
  func.func @self_attention_kernel(%arg0: i32, %arg1: memref<2x8x32xf32, #tpu.memory_space<vmem>>, %arg2: memref<8x32xf32, #tpu.memory_space<vmem>>, %arg3: memref<1x128x384xbf16, #tpu.memory_space<vmem>>, %arg4: memref<1x1x384xf32, #tpu.memory_space<vmem>>, %arg5: memref<1x128x128xbf16, #tpu.memory_space<vmem>>, %arg6: memref<1x1x128xf32, #tpu.memory_space<vmem>>, %arg7: memref<128x128xbf16, #tpu.memory_space<vmem>>, %arg8: memref<1x128xf32, #tpu.memory_space<vmem>>, %arg9: memref<128x128xbf16, #tpu.memory_space<vmem>>, %arg10: memref<1x128xf32, #tpu.memory_space<vmem>>, %arg11: memref<2x128xf32, #tpu.memory_space<vmem>>, %arg12: memref<16x128xf32, #tpu.memory_space<vmem>>) attributes {dimension_semantics = [#tpu.dimension_semantics<arbitrary>], iteration_bounds = array<i64: 3>, scalar_prefetch = 0 : i64, scratch_operands = 1 : i64, tpu.core_type = #tpu.core_type<tc>, window_params = [{pipeline_mode = #tpu.pipeline_mode<synchronous>, transform_indices = @transform_0, window_bounds = array<i64: 2, 8, 32>}, {pipeline_mode = #tpu.pipeline_mode<synchronous>, transform_indices = @transform_1, window_bounds = array<i64: 8, 32>}, {transform_indices = @transform_2, window_bounds = array<i64: 1, 128, 384>}, {transform_indices = @transform_3, window_bounds = array<i64: 1, 1, 384>}, {transform_indices = @transform_4, window_bounds = array<i64: 1, 128, 128>}, {transform_indices = @transform_5, window_bounds = array<i64: 1, 1, 128>}, {pipeline_mode = #tpu.pipeline_mode<synchronous>, transform_indices = @transform_6, window_bounds = array<i64: 128, 128>}, {pipeline_mode = #tpu.pipeline_mode<synchronous>, transform_indices = @transform_7, window_bounds = array<i64: 1, 128>}, {pipeline_mode = #tpu.pipeline_mode<synchronous>, transform_indices = @transform_8, window_bounds = array<i64: 128, 128>}, {pipeline_mode = #tpu.pipeline_mode<synchronous>, transform_indices = @transform_9, window_bounds = array<i64: 1, 128>}, {pipeline_mode = #tpu.pipeline_mode<synchronous>, transform_indices = @transform_10, window_bounds = array<i64: 2, 128>}]} {
    %c0_i32 = arith.constant 0 : i32
    %0 = arith.cmpi eq, %arg0, %c0_i32 : i32
    %1 = arith.extui %0 : i1 to i32
    %c0_i32_0 = arith.constant 0 : i32
    %2 = arith.cmpi ne, %1, %c0_i32_0 : i32
    scf.if %2 {
      %c0_29 = arith.constant 0 : index
      %c0_30 = arith.constant 0 : index
      %c0_31 = arith.constant 0 : index
      %65 = vector.load %arg1[%c0_29, %c0_30, %c0_31] : memref<2x8x32xf32, #tpu.memory_space<vmem>>, vector<2x8x32xf32>
      %c0_32 = arith.constant 0 : index
      %c0_33 = arith.constant 0 : index
      %66 = vector.load %arg2[%c0_32, %c0_33] : memref<8x32xf32, #tpu.memory_space<vmem>>, vector<8x32xf32>
      %67 = vector.shape_cast %66 : vector<8x32xf32> to vector<1x8x32xf32>
      %68 = vector.broadcast %67 : vector<1x8x32xf32> to vector<2x8x32xf32>
      %69 = arith.addf %65, %68 : vector<2x8x32xf32>
      %70 = vector.shape_cast %69 : vector<2x8x32xf32> to vector<16x32xf32>
      %cst_34 = arith.constant 0.000000e+00 : f32
      %71 = vector.broadcast %cst_34 : f32 to vector<16x128xf32>
      %c0_35 = arith.constant 0 : index
      %c0_36 = arith.constant 0 : index
      %72 = vector.load %arg12[%c0_35, %c0_36] : memref<16x128xf32, #tpu.memory_space<vmem>>, vector<16x128xf32>
      tpu.vector_store %arg12[%c0_35, %c0_36], %71 {strides = array<i32>} : memref<16x128xf32, #tpu.memory_space<vmem>>, vector<16x128xf32>,
      %c0_37 = arith.constant 0 : index
      %c0_38 = arith.constant 0 : index
      %73 = vector.load %arg12[%c0_37, %c0_38] : memref<16x128xf32, #tpu.memory_space<vmem>>, vector<16x32xf32>
      tpu.vector_store %arg12[%c0_37, %c0_38], %70 {strides = array<i32>} : memref<16x128xf32, #tpu.memory_space<vmem>>, vector<16x32xf32>,
    } else {
    }
    %c0 = arith.constant 0 : index
    %c0_1 = arith.constant 0 : index
    %3 = vector.load %arg12[%c0, %c0_1] : memref<16x128xf32, #tpu.memory_space<vmem>>, vector<16x128xf32>
    %cst = arith.constant 1.000000e+00 : f32
    %4 = vector.broadcast %cst : f32 to vector<1x16xf32>
    %cst_2 = arith.constant dense<0.000000e+00> : vector<1x128xf32>
    %5 = tpu.matmul %4, %3, %cst_2 {dimension_numbers = #tpu.dot_dimension_numbers<[1], [0], [0], [1], [0, 0, 1, 1], [], []>} : vector<1x16xf32>, vector<16x128xf32>, vector<1x128xf32> -> vector<1x128xf32>
    %cst_3 = arith.constant 6.250000e-02 : f32
    %6 = vector.broadcast %cst_3 : f32 to vector<1x128xf32>
    %7 = arith.mulf %5, %6 : vector<1x128xf32>
    %8 = vector.broadcast %7 : vector<1x128xf32> to vector<16x128xf32>
    %9 = arith.subf %3, %8 : vector<16x128xf32>
    %10 = arith.mulf %9, %9 : vector<16x128xf32>
    %cst_4 = arith.constant dense<0.000000e+00> : vector<1x128xf32>
    %11 = tpu.matmul %4, %10, %cst_4 {dimension_numbers = #tpu.dot_dimension_numbers<[1], [0], [0], [1], [0, 0, 1, 1], [], []>} : vector<1x16xf32>, vector<16x128xf32>, vector<1x128xf32> -> vector<1x128xf32>
    %cst_5 = arith.constant 6.250000e-02 : f32
    %12 = vector.broadcast %cst_5 : f32 to vector<1x128xf32>
    %13 = arith.mulf %11, %12 : vector<1x128xf32>
    %cst_6 = arith.constant 9.99999974E-6 : f32
    %14 = vector.broadcast %cst_6 : f32 to vector<1x128xf32>
    %15 = arith.addf %13, %14 : vector<1x128xf32>
    %16 = math.rsqrt %15 : vector<1x128xf32>
    %17 = vector.broadcast %16 : vector<1x128xf32> to vector<16x128xf32>
    %18 = arith.mulf %9, %17 : vector<16x128xf32>
    %19 = arith.truncf %18 : vector<16x128xf32> to vector<16x128xbf16>
    %c0_7 = arith.constant 0 : index
    %c0_8 = arith.constant 0 : index
    %c0_9 = arith.constant 0 : index
    %20 = vector.load %arg3[%c0_7, %c0_8, %c0_9] : memref<1x128x384xbf16, #tpu.memory_space<vmem>>, vector<1x128x384xbf16>
    %21 = vector.shape_cast %20 : vector<1x128x384xbf16> to vector<128x384xbf16>
    %cst_10 = arith.constant dense<0.000000e+00> : vector<16x384xf32>
    %22 = tpu.matmul %19, %21, %cst_10 {dimension_numbers = #tpu.dot_dimension_numbers<[1], [0], [0], [1], [0, 0, 1, 1], [], []>} : vector<16x128xbf16>, vector<128x384xbf16>, vector<16x384xf32> -> vector<16x384xf32>
    %c0_11 = arith.constant 0 : index
    %c0_12 = arith.constant 0 : index
    %c0_13 = arith.constant 0 : index
    %23 = vector.load %arg4[%c0_11, %c0_12, %c0_13] : memref<1x1x384xf32, #tpu.memory_space<vmem>>, vector<1x1x384xf32>
    %24 = vector.shape_cast %23 : vector<1x1x384xf32> to vector<1x384xf32>
    %25 = vector.broadcast %24 : vector<1x384xf32> to vector<16x384xf32>
    %26 = arith.addf %22, %25 : vector<16x384xf32>
    %27 = vector.extract_strided_slice %26 {offsets = [0, 0], sizes = [16, 128], strides = [1, 1]} : vector<16x384xf32> to vector<16x128xf32>
    %28 = vector.shape_cast %27 : vector<16x128xf32> to vector<2x8x128xf32>
    %29 = vector.extract_strided_slice %26 {offsets = [0, 128], sizes = [16, 128], strides = [1, 1]} : vector<16x384xf32> to vector<16x128xf32>
    %30 = vector.shape_cast %29 : vector<16x128xf32> to vector<2x8x128xf32>
    %31 = vector.extract_strided_slice %26 {offsets = [0, 256], sizes = [16, 128], strides = [1, 1]} : vector<16x384xf32> to vector<16x128xf32>
    %32 = vector.shape_cast %31 : vector<16x128xf32> to vector<2x8x128xf32>
    %33 = arith.truncf %30 : vector<2x8x128xf32> to vector<2x8x128xbf16>
    %34 = arith.truncf %28 : vector<2x8x128xf32> to vector<2x8x128xbf16>
    "tpu.trace_start"() <{level = 10 : i32, message = "bqe,bke->bqk"}> : () -> ()
    %cst_14 = arith.constant dense<0.000000e+00> : vector<2x8x8xf32>
    %35 = tpu.matmul %33, %34, %cst_14 {dimension_numbers = #tpu.dot_dimension_numbers<[2], [2], [1], [1], [0, 0, 0, 1, 1, 1], [0], [0]>} : vector<2x8x128xbf16>, vector<2x8x128xbf16>, vector<2x8x8xf32> -> vector<2x8x8xf32>
    "tpu.trace_stop"() : () -> ()
    %cst_15 = arith.constant dense<0xFF800000> : vector<2x8xf32>
    %36 = vector.multi_reduction <maximumf>, %35, %cst_15 [2] : vector<2x8x8xf32> to vector<2x8xf32>
    %37 = vector.shape_cast %36 : vector<2x8xf32> to vector<2x8x1xf32>
    %38 = vector.broadcast %37 : vector<2x8x1xf32> to vector<2x8x8xf32>
    %39 = arith.subf %35, %38 : vector<2x8x8xf32>
    %40 = math.exp %39 : vector<2x8x8xf32>
    %cst_16 = arith.constant dense<0.000000e+00> : vector<2x8xf32>
    %41 = vector.multi_reduction <add>, %40, %cst_16 [2] : vector<2x8x8xf32> to vector<2x8xf32>
    %42 = vector.shape_cast %41 : vector<2x8xf32> to vector<2x8x1xf32>
    %43 = tpu.reciprocal %42 {approx = true} : vector<2x8x1xf32> -> vector<2x8x1xf32>
    %44 = vector.broadcast %43 : vector<2x8x1xf32> to vector<2x8x8xf32>
    %45 = arith.mulf %40, %44 : vector<2x8x8xf32>
    %46 = arith.truncf %45 : vector<2x8x8xf32> to vector<2x8x8xbf16>
    %47 = arith.truncf %32 : vector<2x8x128xf32> to vector<2x8x128xbf16>
    "tpu.trace_start"() <{level = 10 : i32, message = "bqk,bke->bqe"}> : () -> ()
    %cst_17 = arith.constant dense<0.000000e+00> : vector<2x8x128xf32>
    %48 = tpu.matmul %46, %47, %cst_17 {dimension_numbers = #tpu.dot_dimension_numbers<[2], [1], [1], [2], [0, 0, 0, 1, 1, 2], [0], [0]>} : vector<2x8x8xbf16>, vector<2x8x128xbf16>, vector<2x8x128xf32> -> vector<2x8x128xf32>
    "tpu.trace_stop"() : () -> ()
    %49 = vector.shape_cast %48 : vector<2x8x128xf32> to vector<16x128xf32>
    %50 = arith.addf %3, %49 : vector<16x128xf32>
    %51 = arith.truncf %50 : vector<16x128xf32> to vector<16x128xbf16>
    %c0_18 = arith.constant 0 : index
    %c0_19 = arith.constant 0 : index
    %c0_20 = arith.constant 0 : index
    %52 = vector.load %arg5[%c0_18, %c0_19, %c0_20] : memref<1x128x128xbf16, #tpu.memory_space<vmem>>, vector<1x128x128xbf16>
    %53 = vector.shape_cast %52 : vector<1x128x128xbf16> to vector<128x128xbf16>
    %cst_21 = arith.constant dense<0.000000e+00> : vector<16x128xf32>
    %54 = tpu.matmul %51, %53, %cst_21 {dimension_numbers = #tpu.dot_dimension_numbers<[1], [0], [0], [1], [0, 0, 1, 1], [], []>} : vector<16x128xbf16>, vector<128x128xbf16>, vector<16x128xf32> -> vector<16x128xf32>
    %c0_22 = arith.constant 0 : index
    %c0_23 = arith.constant 0 : index
    %c0_24 = arith.constant 0 : index
    %55 = vector.load %arg6[%c0_22, %c0_23, %c0_24] : memref<1x1x128xf32, #tpu.memory_space<vmem>>, vector<1x1x128xf32>
    %56 = vector.shape_cast %55 : vector<1x1x128xf32> to vector<1x128xf32>
    %57 = vector.broadcast %56 : vector<1x128xf32> to vector<16x128xf32>
    %58 = arith.addf %54, %57 : vector<16x128xf32>
    %cst_25 = arith.constant 0.000000e+00 : f32
    %59 = vector.broadcast %cst_25 : f32 to vector<16x128xf32>
    %60 = arith.maximumf %58, %59 : vector<16x128xf32>
    %c0_26 = arith.constant 0 : index
    %c0_27 = arith.constant 0 : index
    %61 = vector.load %arg12[%c0_26, %c0_27] : memref<16x128xf32, #tpu.memory_space<vmem>>, vector<16x128xf32>
    tpu.vector_store %arg12[%c0_26, %c0_27], %60 {strides = array<i32>} : memref<16x128xf32, #tpu.memory_space<vmem>>, vector<16x128xf32>,
    %c2_i32 = arith.constant 2 : i32
    %62 = arith.cmpi eq, %arg0, %c2_i32 : i32
    %63 = arith.extui %62 : i1 to i32
    %c0_i32_28 = arith.constant 0 : i32
    %64 = arith.cmpi ne, %63, %c0_i32_28 : i32
    scf.if %64 {
      %65 = tpu.iota {dimensions = array<i32: 0>} : vector<2x16xi32>
      %66 = tpu.iota {dimensions = array<i32: 1>} : vector<2x16xi32>
      %c8_i32 = arith.constant 8 : i32
      %67 = vector.broadcast %c8_i32 : i32 to vector<2x16xi32>
      %68 = arith.muli %65, %67 : vector<2x16xi32>
      %69 = arith.cmpi sge, %66, %68 : vector<2x16xi32>
      %c1_i32 = arith.constant 1 : i32
      %70 = vector.broadcast %c1_i32 : i32 to vector<2x16xi32>
      %71 = arith.addi %65, %70 : vector<2x16xi32>
      %c8_i32_29 = arith.constant 8 : i32
      %72 = vector.broadcast %c8_i32_29 : i32 to vector<2x16xi32>
      %73 = arith.muli %71, %72 : vector<2x16xi32>
      %74 = arith.cmpi slt, %66, %73 : vector<2x16xi32>
      %75 = arith.andi %69, %74 : vector<2x16xi1>
      %cst_30 = arith.constant 1.250000e-01 : f32
      %cst_31 = arith.constant 0.000000e+00 : f32
      %76 = vector.broadcast %cst_30 : f32 to vector<2x16xf32>
      %77 = vector.broadcast %cst_31 : f32 to vector<2x16xf32>
      %78 = arith.select %75, %76, %77 : vector<2x16xi1>, vector<2x16xf32>
      %cst_32 = arith.constant dense<0.000000e+00> : vector<2x128xf32>
      %79 = tpu.matmul %78, %60, %cst_32 {dimension_numbers = #tpu.dot_dimension_numbers<[1], [0], [0], [1], [0, 0, 1, 1], [], []>} : vector<2x16xf32>, vector<16x128xf32>, vector<2x128xf32> -> vector<2x128xf32>
      %80 = arith.truncf %79 : vector<2x128xf32> to vector<2x128xbf16>
      %c0_33 = arith.constant 0 : index
      %c0_34 = arith.constant 0 : index
      %81 = vector.load %arg7[%c0_33, %c0_34] : memref<128x128xbf16, #tpu.memory_space<vmem>>, vector<128x128xbf16>
      %cst_35 = arith.constant dense<0.000000e+00> : vector<2x128xf32>
      %82 = tpu.matmul %80, %81, %cst_35 {dimension_numbers = #tpu.dot_dimension_numbers<[1], [0], [0], [1], [0, 0, 1, 1], [], []>} : vector<2x128xbf16>, vector<128x128xbf16>, vector<2x128xf32> -> vector<2x128xf32>
      %c0_36 = arith.constant 0 : index
      %c0_37 = arith.constant 0 : index
      %83 = vector.load %arg8[%c0_36, %c0_37] : memref<1x128xf32, #tpu.memory_space<vmem>>, vector<1x128xf32>
      %84 = vector.broadcast %83 : vector<1x128xf32> to vector<2x128xf32>
      %85 = arith.addf %82, %84 : vector<2x128xf32>
      %cst_38 = arith.constant 0.000000e+00 : f32
      %86 = vector.broadcast %cst_38 : f32 to vector<2x128xf32>
      %87 = arith.maximumf %85, %86 : vector<2x128xf32>
      %88 = arith.truncf %87 : vector<2x128xf32> to vector<2x128xbf16>
      %c0_39 = arith.constant 0 : index
      %c0_40 = arith.constant 0 : index
      %89 = vector.load %arg9[%c0_39, %c0_40] : memref<128x128xbf16, #tpu.memory_space<vmem>>, vector<128x128xbf16>
      %cst_41 = arith.constant dense<0.000000e+00> : vector<2x128xf32>
      %90 = tpu.matmul %88, %89, %cst_41 {dimension_numbers = #tpu.dot_dimension_numbers<[1], [0], [0], [1], [0, 0, 1, 1], [], []>} : vector<2x128xbf16>, vector<128x128xbf16>, vector<2x128xf32> -> vector<2x128xf32>
      %c0_42 = arith.constant 0 : index
      %c0_43 = arith.constant 0 : index
      %91 = vector.load %arg10[%c0_42, %c0_43] : memref<1x128xf32, #tpu.memory_space<vmem>>, vector<1x128xf32>
      %92 = vector.broadcast %91 : vector<1x128xf32> to vector<2x128xf32>
      %93 = arith.addf %90, %92 : vector<2x128xf32>
      %cst_44 = arith.constant 0.000000e+00 : f32
      %94 = vector.broadcast %cst_44 : f32 to vector<2x128xf32>
      %95 = arith.maximumf %93, %94 : vector<2x128xf32>
      %c0_45 = arith.constant 0 : index
      %c0_46 = arith.constant 0 : index
      %96 = vector.load %arg11[%c0_45, %c0_46] : memref<2x128xf32, #tpu.memory_space<vmem>>, vector<2x128xf32>
      tpu.vector_store %arg11[%c0_45, %c0_46], %95 {strides = array<i32>} : memref<2x128xf32, #tpu.memory_space<vmem>>, vector<2x128xf32>,
    } else {
    }
    return
  }
  func.func @transform_0(%arg0: i32) -> (i32, i32, i32) {
    %c0_i32 = arith.constant 0 : i32
    %c0_i32_0 = arith.constant 0 : i32
    %c0_i32_1 = arith.constant 0 : i32
    %c0_i32_2 = arith.constant 0 : i32
    return %c0_i32, %c0_i32_0, %c0_i32_1 : i32, i32, i32
  }
  func.func @transform_1(%arg0: i32) -> (i32, i32) {
    %c0_i32 = arith.constant 0 : i32
    %c0_i32_0 = arith.constant 0 : i32
    %c0_i32_1 = arith.constant 0 : i32
    return %c0_i32, %c0_i32_0 : i32, i32
  }
  func.func @transform_2(%arg0: i32) -> (i32, i32, i32) {
    %c0_i32 = arith.constant 0 : i32
    %c0_i32_0 = arith.constant 0 : i32
    %c0_i32_1 = arith.constant 0 : i32
    return %arg0, %c0_i32, %c0_i32_0 : i32, i32, i32
  }
  func.func @transform_3(%arg0: i32) -> (i32, i32, i32) {
    %c0_i32 = arith.constant 0 : i32
    %c0_i32_0 = arith.constant 0 : i32
    %c0_i32_1 = arith.constant 0 : i32
    return %arg0, %c0_i32, %c0_i32_0 : i32, i32, i32
  }
  func.func @transform_4(%arg0: i32) -> (i32, i32, i32) {
    %c0_i32 = arith.constant 0 : i32
    %c0_i32_0 = arith.constant 0 : i32
    %c0_i32_1 = arith.constant 0 : i32
    return %arg0, %c0_i32, %c0_i32_0 : i32, i32, i32
  }
  func.func @transform_5(%arg0: i32) -> (i32, i32, i32) {
    %c0_i32 = arith.constant 0 : i32
    %c0_i32_0 = arith.constant 0 : i32
    %c0_i32_1 = arith.constant 0 : i32
    return %arg0, %c0_i32, %c0_i32_0 : i32, i32, i32
  }
  func.func @transform_6(%arg0: i32) -> (i32, i32) {
    %c0_i32 = arith.constant 0 : i32
    %c0_i32_0 = arith.constant 0 : i32
    %c0_i32_1 = arith.constant 0 : i32
    return %c0_i32, %c0_i32_0 : i32, i32
  }
  func.func @transform_7(%arg0: i32) -> (i32, i32) {
    %c0_i32 = arith.constant 0 : i32
    %c0_i32_0 = arith.constant 0 : i32
    %c0_i32_1 = arith.constant 0 : i32
    return %c0_i32, %c0_i32_0 : i32, i32
  }
  func.func @transform_8(%arg0: i32) -> (i32, i32) {
    %c0_i32 = arith.constant 0 : i32
    %c0_i32_0 = arith.constant 0 : i32
    %c0_i32_1 = arith.constant 0 : i32
    return %c0_i32, %c0_i32_0 : i32, i32
  }
  func.func @transform_9(%arg0: i32) -> (i32, i32) {
    %c0_i32 = arith.constant 0 : i32
    %c0_i32_0 = arith.constant 0 : i32
    %c0_i32_1 = arith.constant 0 : i32
    return %c0_i32, %c0_i32_0 : i32, i32
  }
  func.func @transform_10(%arg0: i32) -> (i32, i32) {
    %c0_i32 = arith.constant 0 : i32
    %c0_i32_0 = arith.constant 0 : i32
    %c0_i32_1 = arith.constant 0 : i32
    return %c0_i32, %c0_i32_0 : i32, i32
  }
}

</mosaic_0001>

<bundles_post_ra>
// kernel: self_attention_forward.1
= control target key start
LH: loop header
LB: loop body
LE: loop exit
PB: predicated region body
PF: predicated region fallthrough
CT: control target
= control target key end

     0   :  { %15 = vsyncpa [#allocation4], 0  ;;  %s2537_s0 = inlined_call_operand.vmem [shape: f32[2,8,32], index: 0, kind: input, shape index: {}]   ;;  %s2538_s1 = inlined_call_operand.vmem [shape: f32[8,32], index: 1, kind: input, shape index: {}]   ;;  %s2539_s2 = inlined_call_operand.hbm [shape: bf16[3,128,384], index: 2, kind: input, shape index: {}]   ;;  %s2540_s3 = inlined_call_operand.vmem [shape: f32[3,1,384], index: 3, kind: input, shape index: {}]   ;;  %s2541_s4 = inlined_call_operand.vmem [shape: bf16[3,128,128], index: 4, kind: input, shape index: {}]   ;;  %s2542_s5 = inlined_call_operand.vmem [shape: f32[3,1,128], index: 5, kind: input, shape index: {}]   ;;  %s2543_s6 = inlined_call_operand.vmem [shape: bf16[128,128], index: 6, kind: input, shape index: {}]   ;;  %s2544_s7 = inlined_call_operand.vmem [shape: f32[1,128], index: 7, kind: input, shape index: {}]   ;;  %s2545_s8 = inlined_call_operand.hbm [shape: bf16[128,128], index: 8, kind: input, shape index: {}]   ;;  %s2546_s9 = inlined_call_operand.vmem [shape: f32[1,128], index: 9, kind: input, shape index: {}]   ;;  %s2547_s10 = inlined_call_operand.hbm [shape: f32[2,128], index: 10, kind: output, shape index: {}]  }
   0x1   :  { %17 = vsyncpa [#allocation4 + $0x1], 0 }
   0x2   :  { %18 = vsyncpa [#allocation7], 0 }
   0x3   :  { %19 = vsyncpa [#allocation5], 0  ;;  %s2190_s13 = smov 0   ;;  %s2192_s14 = smov 0  }
   0x4   :  { %s2194_s15 = smov 0   ;;  %s2196_s16 = smov 0  }
   0x5 LB: > { %s2209_s17 = sadd.s32 4294967295, %s2119_s16   ;;  %p87_p0 = scmp.ne.s32.totalorder %s2111_s14, %s2107_s13  ;;  %s2119_s16 = sphi %s2196_s16, %s2563_s16   ;;  %s2115_s15 = sphi %s2194_s15, %s2566_s15   ;;  %s2111_s14 = sphi %s2192_s14, %s2565_s14   ;;  %s2107_s13 = sphi %s2190_s13, %s2564_s13  }
   0x6   : > { %p2550_p1 = scmp.eq.s32.totalorder %s2209_s17, 0  ;;  %p1612_p2 = scmp.ge.s32.totalorder %s2119_s16, 1 }
   0x7   : > { %p281_p3 = scmp.lt.s32.totalorder %s2119_s16, 4  ;;  %s2121_s20 = smov [#allocation6]  }
   0x8   : > { %p2218_p5 = por %p2550_p1, %p87_p0  ;;  %s305_s21 = sshll.u32 %s2121_s20, 4  ;;  %s306_s21 = int_to_ptr.vmem [resolvable:$true] %s305_s21 }
   0x9   : > { %p2222_p6 = pnand %p1612_p2, %p281_p3  ;;  %s2235_s23 = sadd.s32 1, %s2119_s16  }
   0xa   : > { %s2553_s18 = scalar_select %p2218_p5, 1, 0 }
   0xb   : > { %s2554_s19 = scalar_select %p2222_p6, 1, 0 }
   0xc   : > { %p1875_p7 = pneg %p2222_p6  ;;  %2556 = sst [smem:[#allocation12_spill]] %s2235_s23 }
   0xd   : > { %s74_s24 = sadd.s32 1, %s2115_s15  ;;  %s71_s25 = ssub.s32 %s2119_s16, %s2235_s23 }
   0xe   : > { %p2230_p8 = pnand %p1875_p7, %p2550_p1  ;;  %s2010_s26 = scalar_lea.vmem %s306_s21, 1024 }
   0xf   : > { %p2011_p10 = scmp.ne.s32.totalorder %s306_s21, %s2010_s26  ;;  %p2018_p13 = scmp.lt.s32.totalorder %s306_s21, %s306_s21 }
  0x10   : > { %p2001_p9 = pneg %p2230_p8  ;;  %p2019_p0 = scmp.lt.s32.totalorder %s2010_s26, %s2010_s26 }
  0x12   : > { %p2013_p11 = pnand %p2011_p10, %p2001_p9  ;;  %p2020_p2 = por %p2019_p0, %p2018_p13 }
  0x14   : > { %p2014_p12 = pneg %p2013_p11 }
  0x16   : > { %p2021_p3 = pnand %p2020_p2, %p2014_p12 }
  0x18   : > { %2024 = shalt.err (!%p2021_p3)
}
  0x19   : > { %s2122_s27 = smov 64   ;;  %s2123_s28 = smov 4  }
  0x1a   : > { %1878 = dma.hbm_to_vmem [thread:$0]  (!%p2230_p8), %s2545_s8, 1024, %s306_s21, [#allocation7], %s2122_s27, %s2122_s27, %s2123_s28  }
  0x1b   : > { %p72_p7 = scmp.eq.s32.totalorder %s71_s25, 0  ;;  %p81_p9 = scmp.ne.s32.totalorder %s2115_s15, %s2111_s14 }
  0x1c   : > { %p82_p10 = scmp.eq.s32.totalorder %s2119_s16, 0  ;;  %p1884_p11 = scmp.lt.s32.totalorder %s2119_s16, 3 }
  0x1d   : > { %s2252_s11 = scalar_select %p72_p7, %s2115_s15, %s74_s24  }
  0x1e   : > { %p83_p12 = por %p82_p10, %p81_p9  ;;  %s322_s12 = sand.u32 1, %s2115_s15  }
  0x1f   : > { %s1861_s13 = smul.u32 192, %s322_s12  ;;  %s2267_s25 = scalar_lea.sflag [#allocation4], %s322_s12 }
  0x20   : > { %s1862_s20 = smul.u32 3072, %s2119_s16  ;;  %p2256_p13 = pnand %p1884_p11, %p83_p12 }
  0x21   : > { %s326_s21 = scalar_lea.vmem [#allocation3], %s1861_s13  ;;  %s2030_s28 = scalar_lea.hbm %s2539_s2, 9216 }
  0x22   : > { %s2263_s29 = scalar_lea.hbm %s2539_s2, %s1862_s20  ;;  %s333_s24 = sshll.u32 %s326_s21, 4  ;;  %s2265_s24 = int_to_ptr.vmem [resolvable:$true] %s333_s24 }
  0x23   : > { %s2025_s16 = scalar_lea.hbm %s2263_s29, 3072  ;;  %p2027_p0 = pneg %p2256_p13 }
  0x24   : > { %p2026_p8 = scmp.ne.s32.totalorder %s2263_s29, %s2025_s16  ;;  %p2031_p7 = scmp.lt.s32.totalorder %s2263_s29, %s2539_s2 }
  0x25   : > { %p2032_p9 = scmp.lt.s32.totalorder %s2030_s28, %s2025_s16 }
  0x26   : > { %p2028_p2 = pnand %p2027_p0, %p2026_p8 }
  0x27   : > { %p2033_p10 = por %p2032_p9, %p2031_p7 }
  0x28   : > { %p2029_p3 = pneg %p2028_p2 }
  0x2a   : > { %p2034_p11 = pnand %p2033_p10, %p2029_p3 }
  0x2c   : > { %2037 = shalt.err (!%p2034_p11)
}
  0x2d   : > { %s2038_s12 = scalar_lea.vmem %s2265_s24, 3072  ;;  %s2124_s13 = smov [#allocation3]  }
  0x2e   : > { %p2039_p12 = scmp.ne.s32.totalorder %s2265_s24, %s2038_s12  ;;  %s2043_s22 = sshll.u32 %s2124_s13, 4  ;;  %s2044_s22 = int_to_ptr.vmem [resolvable:$false] %s2043_s22 }
  0x2f   : > { %s2045_s21 = scalar_lea.vmem %s2044_s22, 6144  ;;  %p2046_p2 = scmp.lt.s32.totalorder %s2265_s24, %s2044_s22 }
  0x30   : > { %p2041_p4 = pnand %p2039_p12, %p2027_p0  ;;  %p2047_p1 = scmp.lt.s32.totalorder %s2045_s21, %s2038_s12 }
  0x32   : > { %p2042_p8 = pneg %p2041_p4  ;;  %p2048_p5 = por %p2047_p1, %p2046_p2 }
  0x34   : > { %p2049_p6 = pnand %p2048_p5, %p2042_p8 }
  0x36   : > { %2052 = shalt.err (!%p2049_p6)
}
  0x37   : > { %s2125_s16 = smov 192   ;;  %s2126_s27 = smov 12  }
  0x38   : > { %1882 = dma.hbm_to_vmem [thread:$0]  (!%p2256_p13), %s2263_s29, 3072, %s2265_s24, %s2267_s25, %s2125_s16, %s2125_s16, %s2126_s27  }
  0x39   : > { %p2558_p0 = scmp.ne.s32.totalorder %s2554_s19, 0 }
  0x3a   : > { %s368_s23 = sand.u32 (!%p2558_p0), 1, %s2111_s14   ;;  %p2559_p1 = scmp.ne.s32.totalorder (!%p2558_p0), %s2553_s18, 0 }
  0x3b   : > { %366 = sbr.rel (%p2558_p0) target bundleno = 2246 (0x8c6), region = 60  ;;  %s369_s30 = scalar_lea.sflag (!%p2558_p0), [#allocation4], %s368_s23 }
  0x3c   : > { %s1863_s28 = smul.u32 (!%p2558_p0), 192, %s368_s23 }
  0x3e   : > { %s2291_s20 = scalar_lea.vmem (!%p2558_p0), [#allocation3], %s1863_s28 }
  0x40   : > { %2094 = dma.done.wait (%p2559_p1), %s369_s30, 3072  }
  0x41   : > { %2096 = vsyncadd (%p2559_p1), %s369_s30, 4294964224  ;;  %p2560_p4 = scmp.eq.s32.totalorder %s2209_s17, 0 }
  0x43   : > { %2098 = dma.done.wait (%p2560_p4), [#allocation7], 1024   ;;  %p2561_p5 = pmov %p2560_p4 }
  0x44   : > { %p420_p6 = scmp.lt.s32.totalorder %s2209_s17, 2  ;;  %p2562_p13 = scmp.ne.s32.totalorder %s2209_s17, 0 }
  0x45   : > { %2100 = vsyncadd (%p2561_p5), [#allocation7], 4294966272 }
  0x46   : > { %s2303_s19 = scalar_select %p420_p6, %s2209_s17, 2 }
  0x47   : > { %436 = sbr.rel (%p2562_p13) target bundleno = 81 (0x51), region = 72 }
  0x48   : > { %s1864_s26 = smul.u32 3, %s2303_s19  ;;  %s1682_s29 = sshll.u32 %s2303_s19, 6 }
  0x49   : > { %s2310_s18 = scalar_lea.vmem %s2541_s4, %s1682_s29  ;;  %s431_s22 = scalar_lea.vmem %s2542_s5, %s2303_s19 }
  0x4a   : > { %s2319_s27 = scalar_lea.vmem %s2540_s3, %s1864_s26 }
  0x4c   : > { %v437_v0 = vld [vmem:[%s2537_s0] sm:$0xff]  ;;  %vm444_vm0 = vcmask 261120   ;;  %v438_v2 = vld [vmem:[%s2537_s0 + $0x8] sm:$0xff]  ;;  %v2127_v3 = vmov 0.0  }
  0x4d   : > { %v439_v1 = vld [vmem:[%s2538_s1] sm:$0xff]  ;;  %442 = vst [vmem:[#allocation2] sm:$0xff] %v2127_v3  ;;  %443 = vst [vmem:[#allocation2 + $0x8] sm:$0xff] %v2127_v3 }
  0x4e   : > { %v440_v4 = vadd.f32 %v439_v1, %v437_v0  ;;  %v441_v5 = vadd.f32 %v439_v1, %v438_v2 }
  0x50   : > { %445 = vst.msk [vmem:[#allocation2] sm:$0xff] %vm444_vm0, %v440_v4  ;;  %446 = vst.msk [vmem:[#allocation2 + $0x8] sm:$0xff] %vm444_vm0, %v441_v5 }
  0x51 PF: > { %v2128_v8 = vmov 0.0   ;;  %vm2129_vm1 = vmmov 0   ;;  %vm449_vm2 = vcmask 130048   ;;  %v2130_v9 = vmov 1.0   ;;  %v1933_v10 = vld [vmem:[%s2291_s20 + $0xa8] ss:$12 sps:$4 sm:$0xff]  }
  0x52   : > { %1736 = vmatprep.subr.mxu0 %v2128_v8  ;;  %1740 = vmatprep.mubr.msk.f32.mxu0 %vm2129_vm1, %v2128_v8  ;;  %v1935_v11 = vld [vmem:[%s2291_s20 + $0xac] ss:$12 sps:$4 sm:$0xff]   ;;  %v1939_v12 = vld [vmem:[%s2291_s20 + $0x94] ss:$12 sps:$4 sm:$0xff]   ;;  %v1937_v13 = vld [vmem:[%s2291_s20 + $0x90] ss:$12 sps:$4 sm:$0xff]   ;;  %v524_v14 = vlaneseq }
  0x53   : > { %1743 = vmatprep.subr.mxu1 %v2128_v8  ;;  %1747 = vmatprep.mubr.msk.f32.mxu1 %vm2129_vm1, %v2128_v8  ;;  %v1936_v25 = vld [vmem:[%s2291_s20 + $0xb0] ss:$12 sps:$4 sm:$0xff]   ;;  %v1940_v26 = vld [vmem:[%s2291_s20 + $0x98] ss:$12 sps:$4 sm:$0xff]   ;;  %v1944_v29 = vld [vmem:[%s2291_s20 + $0x80] ss:$12 sps:$4 sm:$0xff]  }
  0x54   : > { %v2351_v15 = vshrl.u32 %v524_v14, 7  ;;  %v1943_v27 = vld [vmem:[%s2291_s20 + $0x7c] ss:$12 sps:$4 sm:$0xff]   ;;  %v1941_v28 = vld [vmem:[%s2291_s20 + $0x78] ss:$12 sps:$4 sm:$0xff]   ;;  %v2131_v40 = vmov 0  }
  0x55   : > { %v1947_v30 = vld [vmem:[%s2291_s20 + $0x64] ss:$12 sps:$4 sm:$0xff]   ;;  %v1945_v31 = vld [vmem:[%s2291_s20 + $0x60] ss:$12 sps:$4 sm:$0xff]   ;;  %v1948_v32 = vld [vmem:[%s2291_s20 + $0x68] ss:$12 sps:$4 sm:$0xff]  }
  0x56   : > { %v2354_v16 = vsub.s32 0, %v2351_v15  ;;  %v1951_v33 = vld [vmem:[%s2291_s20 + $0x4c] ss:$12 sps:$4 sm:$0xff]   ;;  %v1949_v34 = vld [vmem:[%s2291_s20 + $0x48] ss:$12 sps:$4 sm:$0xff]   ;;  %v652_v57 = vsub.s32 1, %v2351_v15 }
  0x57   : > { %v2332_v6 = vld [vmem:[#allocation2 + $0x8] sm:$0xff]  ;;  %v2334_v7 = vld [vmem:[#allocation2] sm:$0xff]  ;;  %v1960_v42 = vld [vmem:[%s2291_s20 + $0x20] ss:$12 sps:$4 sm:$0xff]   ;;  %v656_v58 = vsub.s32 2, %v2351_v15  ;;  %vm987_vm3 = vcmask 1043456  }
  0x58   : > { %1737 = vmatpush3.msra.mxu0 %v2332_v6  ;;  %v1952_v35 = vld [vmem:[%s2291_s20 + $0x50] ss:$12 sps:$4 sm:$0xff]   ;;  %v1955_v36 = vld [vmem:[%s2291_s20 + $0x34] ss:$12 sps:$4 sm:$0xff]   ;;  %v1956_v38 = vld [vmem:[%s2291_s20 + $0x38] ss:$12 sps:$4 sm:$0xff]  }
  0x59   : > { %1738 = vmatprep.subr.mxu0 %v2128_v8  ;;  %v1953_v37 = vld [vmem:[%s2291_s20 + $0x30] ss:$12 sps:$4 sm:$0xff]   ;;  %v1957_v41 = vld [vmem:[%s2291_s20 + $0x18] ss:$12 sps:$4 sm:$0xff]   ;;  %v1961_v44 = vld [vmem:[%s2291_s20] ss:$12 sps:$4 sm:$0xff]  }
  0x5a   : > { %1739 = vmatpush3.msra.mxu0 %v2334_v7  ;;  %v1959_v39 = vld [vmem:[%s2291_s20 + $0x1c] ss:$12 sps:$4 sm:$0xff]   ;;  %v1963_v43 = vld [vmem:[%s2291_s20 + $0x4] ss:$12 sps:$4 sm:$0xff]   ;;  %vm957_vm4 = vcmask 64512   ;;  %p1658_p3 = scmp.ne.s32.totalorder %s2209_s17, 2 }
  0x5b   : > { %1741 = vmatmul.mubr.msk.f32.vlgmr.msra.gmra.mxu0 %vm449_vm2, %v2130_v9  ;;  %789 = vmatprep.subr.bf16.mxu0 %v1935_v11  ;;  %v1964_v45 = vld [vmem:[%s2291_s20 + $0x8] ss:$12 sps:$4 sm:$0xff]   ;;  %v644_v55 = vld [vmem:[%s2319_s27] sm:$0x7] }
  0x5c   : > { %790 = vmatpush1.bf16.msra.mxu0 %v1933_v10  ;;  %821 = vmatprep.mubr.bf16.mxu0 %v2131_v40  ;;  %v649_v56 = vrot.slane %v644_v55, %v2354_v16  ;;  %v653_v62 = vrot.slane %v644_v55, %v652_v57  ;;  %v657_v2 = vrot.slane %v644_v55, %v656_v58  ;;  %v1970_v57 = vld [vmem:[%s2310_s18 + $0x10] sm:$0xff]   ;;  %v1971_v58 = vld [vmem:[%s2310_s18 + $0x8] sm:$0xff]  }
  0x5d   : > { %791 = vmatprep.subr.bf16.mxu0 %v1939_v12 }
  0x60   : > { %792 = vmatpush1.bf16.msra.mxu0 %v1937_v13 }
  0x61   : > { %793 = vmatprep.subr.bf16.mxu0 %v1943_v27 }
  0x64   : > { %794 = vmatpush1.bf16.msra.mxu0 %v1941_v28 }
  0x65   : > { %795 = vmatprep.subr.bf16.mxu0 %v1947_v30 }
  0x68   : > { %796 = vmatpush1.bf16.msra.mxu0 %v1945_v31 }
  0x69   : > { %797 = vmatprep.subr.bf16.mxu0 %v1951_v33 }
  0x6c   : > { %798 = vmatpush1.bf16.msra.mxu0 %v1949_v34 }
  0x6d   : > { %799 = vmatprep.subr.bf16.mxu0 %v1955_v36 }
  0x70   : > { %800 = vmatpush1.bf16.msra.mxu0 %v1953_v37 }
  0x71   : > { %801 = vmatprep.subr.bf16.mxu0 %v1959_v39 }
  0x74   : > { %802 = vmatpush1.bf16.msra.mxu0 %v1957_v41 }
  0x75   : > { %803 = vmatprep.subr.bf16.mxu0 %v1963_v43 }
  0x78   : > { %804 = vmatpush1.bf16.msra.mxu0 %v1961_v44  ;;  %v1965_v44 = vld [vmem:[%s2310_s18 + $0x38] sm:$0xff]  }
  0x79   : > { %1794 = vmatprep.subr.bf16.mxu0 %v2128_v8 }
 0x11b   : > { %v519_v17 = vpop.f32.mrf.mxu0 }
 0x11c   : > { %v523_v18 = vmul.f32 0.0625, %v519_v17 }
 0x11d   : > { %v1742_v19 = vpop.f32.mrf.mxu0 }
 0x11e   : > { %v527_v20 = vrot.slane %v523_v18, %v2354_v16 }
 0x120   : > { %v2358_v21 = vsub.f32 %v2334_v7, %v527_v20  ;;  %v2361_v22 = vsub.f32 %v2332_v6, %v527_v20 }
 0x122   : > { %v531_v23 = vmul.f32 %v2361_v22, %v2361_v22  ;;  %v530_v24 = vmul.f32 %v2358_v21, %v2358_v21 }
 0x124   : > { %1744 = vmatpush3.msra.mxu1 %v531_v23 }
 0x125   : > { %1745 = vmatprep.subr.mxu1 %v2128_v8 }
 0x126   : > { %1746 = vmatpush3.msra.mxu1 %v530_v24 }
 0x127   : > { %1748 = vmatmul.mubr.msk.f32.vlgmr.msra.gmra.mxu1 %vm449_vm2, %v2130_v9  ;;  %1750 = vmatprep.subr.bf16.mxu1 %v2128_v8 }
 0x128   : > { %1751 = vmatpush3.bf16.msra.mxu1 %v1936_v25  ;;  %1766 = vmatprep.mubr.msk.bf16.mxu1 %vm2129_vm1, %v2128_v8 }
 0x129   : > { %1752 = vmatprep.subr.bf16.mxu1 %v2128_v8 }
 0x12c   : > { %1753 = vmatpush3.bf16.msra.mxu1 %v1940_v26 }
 0x12d   : > { %1754 = vmatprep.subr.bf16.mxu1 %v2128_v8 }
 0x130   : > { %1755 = vmatpush3.bf16.msra.mxu1 %v1944_v29 }
 0x131   : > { %1756 = vmatprep.subr.bf16.mxu1 %v2128_v8 }
 0x134   : > { %1757 = vmatpush3.bf16.msra.mxu1 %v1948_v32 }
 0x135   : > { %1758 = vmatprep.subr.bf16.mxu1 %v2128_v8 }
 0x138   : > { %1759 = vmatpush3.bf16.msra.mxu1 %v1952_v35 }
 0x139   : > { %1760 = vmatprep.subr.bf16.mxu1 %v2128_v8 }
 0x13c   : > { %1761 = vmatpush3.bf16.msra.mxu1 %v1956_v38 }
 0x13d   : > { %1762 = vmatprep.subr.bf16.mxu1 %v2128_v8 }
 0x140   : > { %1763 = vmatpush3.bf16.msra.mxu1 %v1960_v42 }
 0x141   : > { %1764 = vmatprep.subr.bf16.mxu1 %v2128_v8 }
 0x144   : > { %1765 = vmatpush3.bf16.msra.mxu1 %v1964_v45  ;;  %v1966_v45 = vld [vmem:[%s2310_s18 + $0x30] sm:$0xff]  }
 0x145   : > { %1770 = vmatprep.subr.bf16.mxu1 %v2128_v8 }
 0x1e7   : > { %v598_v46 = vpop.f32.mrf.mxu1 }
 0x1e8   : > { %v602_v47 = vmul.f32 0.0625, %v598_v46  ;;  %v1967_v46 = vld [vmem:[%s2310_s18 + $0x28] sm:$0xff]  }
 0x1e9   : > { %v1749_v48 = vpop.f32.mrf.mxu1 }
 0x1ea   : > { %v603_v49 = vadd.f32 1e-05, %v602_v47  ;;  %v1968_v47 = vld [vmem:[%s2310_s18 + $0x20] sm:$0xff]   ;;  %v1969_v48 = vld [vmem:[%s2310_s18 + $0x18] sm:$0xff]  }
 0x1ec   : > { %1973 = vrsqrt.f32 %v603_v49 }
 0x1f9   : > { %v1974_v50 = vpop.eup %1973 }
 0x1fa   : > { %v608_v51 = vrot.slane %v1974_v50, %v2354_v16 }
 0x1fc   : > { %v609_v52 = vmul.f32 %v608_v51, %v2358_v21  ;;  %v610_v53 = vmul.f32 %v608_v51, %v2361_v22 }
 0x1fe   : > { %v611_v54 = vpack.c.bf16 %v610_v53, %v609_v52 }
 0x200   : > { %822 = vmatmul.mubr.bf16.vlgmr.msra.gmra.mxu0 %v611_v54  ;;  %1767 = vmatmul.mubr.bf16.vlgmr.msra.gmra.mxu1 %v611_v54 }
 0x201   : > { %1772 = vmatprep.mubr.msk.bf16.mxu1 %vm2129_vm1, %v2128_v8  ;;  %1810 = vmatprep.mubr.msk.bf16.mxu0 %vm2129_vm1, %v2128_v8 }
 0x202   : > { %1795 = vmatpush3.bf16.msra.mxu0 %v1965_v44 }
 0x203   : > { %1796 = vmatprep.subr.bf16.mxu0 %v2128_v8 }
 0x206   : > { %1797 = vmatpush3.bf16.msra.mxu0 %v1966_v45 }
 0x207   : > { %1798 = vmatprep.subr.bf16.mxu0 %v2128_v8 }
 0x20a   : > { %1799 = vmatpush3.bf16.msra.mxu0 %v1967_v46 }
 0x20b   : > { %1800 = vmatprep.subr.bf16.mxu0 %v2128_v8 }
 0x20e   : > { %1801 = vmatpush3.bf16.msra.mxu0 %v1968_v47 }
 0x20f   : > { %1802 = vmatprep.subr.bf16.mxu0 %v2128_v8 }
 0x212   : > { %1803 = vmatpush3.bf16.msra.mxu0 %v1969_v48 }
 0x213   : > { %1804 = vmatprep.subr.bf16.mxu0 %v2128_v8 }
 0x216   : > { %1805 = vmatpush3.bf16.msra.mxu0 %v1970_v57 }
 0x217   : > { %1806 = vmatprep.subr.bf16.mxu0 %v2128_v8 }
 0x21a   : > { %1807 = vmatpush3.bf16.msra.mxu0 %v1971_v58 }
 0x21b   : > { %1808 = vmatprep.subr.bf16.mxu0 %v2128_v8 }
 0x2c0   : > { %v823_v59 = vpop.f32.mrf.mxu0  ;;  %v866_v60 = vpop.f32.mrf.mxu1 }
 0x2c1   : > { %v824_v61 = vadd.f32 %v823_v59, %v649_v56  ;;  %v867_v19 = vadd.f32 %v866_v60, %v657_v2  ;;  %v1972_v59 = vld [vmem:[%s2310_s18] sm:$0xff]  }
 0x2c2   : > { %v825_v63 = vpop.f32.mrf.mxu0  ;;  %v1768_v0 = vpop.f32.mrf.mxu1  ;;  %1809 = vmatpush3.bf16.msra.mxu0 %v1972_v59 }
 0x2c3   : > { %v875_v1 = vpack.c.bf16 %v824_v61, %v824_v61  ;;  %v826_v9 = vadd.f32 %v825_v63, %v653_v62  ;;  %v982_v21 = vpack.c.bf16 %v867_v19, %v867_v19 }
 0x2c4   : > { %v827_v3 = vpop.f32.mrf.mxu0  ;;  %v869_v4 = vpop.f32.mrf.mxu1 }
 0x2c5   : > { %v870_v5 = vadd.f32 %v869_v4, %v657_v2  ;;  %1771 = vmatpush3.bf16.xpose.msra.mxu1 %v875_v1  ;;  %v828_v11 = vadd.f32 %v827_v3, %v649_v56  ;;  %v873_v16 = vpack.c.bf16 %v826_v9, %v826_v9  ;;  %v989_v23 = vsel %vm987_vm3, %v982_v21, 0 }
 0x2c6   : > { %v1769_v10 = vpop.f32.mrf.mxu1  ;;  %1776 = vmatprep.subr.bf16.mxu1 %v2128_v8  ;;  %v829_v18 = vpop.f32.mrf.mxu0 }
 0x2c7   : > { %v983_v12 = vpack.c.bf16 %v870_v5, %v870_v5  ;;  %v876_v17 = vpack.c.bf16 %v828_v11, %v828_v11  ;;  %v830_v20 = vadd.f32 %v829_v18, %v653_v62 }
 0x2c9   : > { %v2413_v13 = vsel %vm987_vm3, %v983_v12, 0  ;;  %v874_v22 = vpack.c.bf16 %v830_v20, %v830_v20 }
 0x2cc   : > { %1773 = vmatmul.mubr.bf16.vlgmr.msra.gmra.mxu1 %v873_v16 }
 0x2cd   : > { %1777 = vmatpush3.bf16.xpose.msra.mxu1 %v876_v17  ;;  %1778 = vmatprep.mubr.msk.bf16.mxu1 %vm2129_vm1, %v2128_v8 }
 0x2ce   : > { %1782 = vmatprep.subr.bf16.mxu1 %v2128_v8 }
 0x2d4   : > { %1779 = vmatmul.mubr.bf16.vlgmr.msra.gmra.mxu1 %v874_v22 }
 0x2d5   : > { %1783 = vmatpush3.bf16.msra.mxu1 %v989_v23  ;;  %1784 = vmatprep.mubr.msk.bf16.mxu1 %vm2129_vm1, %v2128_v8 }
 0x2d6   : > { %1788 = vmatprep.subr.bf16.mxu1 %v2128_v8 }
 0x38c   : > { %v911_v24 = vpop.f32.mrf.mxu1 }
 0x38d   : > { %v958_v25 = vsel %vm957_vm4, %v911_v24, -inf }
 0x38e   : > { %959 = vmax.xlane.f32.xlu0 %v958_v25  ;;  %v1774_v26 = vpop.f32.mrf.mxu1 }
 0x390   : > { %v914_v27 = vpop.f32.mrf.mxu1 }
 0x392   : > { %v1775_v28 = vpop.f32.mrf.mxu1 }
 0x394   : > { %v951_v29 = vpop.f32.mrf.mxu1 }
 0x395   : > { %v961_v30 = vsel %vm957_vm4, %v951_v29, -inf }
 0x396   : > { %962 = vmax.xlane.f32.xlu0 %v961_v30  ;;  %v1780_v31 = vpop.f32.mrf.mxu1 }
 0x398   : > { %v954_v32 = vpop.f32.mrf.mxu1 }
 0x39a   : > { %v1781_v33 = vpop.f32.mrf.mxu1 }
 0x417   : > { %v960_v34 = vpop.xlane.xlu0 %959 }
 0x418   : > { %v964_v35 = vsub.f32 %v911_v24, %v960_v34 }
 0x41a   : > { %v966_v36 = vmul.f32 1.442695, %v964_v35 }
 0x41c   : > { %1975 = vpow2.f32 %v966_v36 }
 0x41f   : > { %v963_v37 = vpop.xlane.xlu0 %962 }
 0x420   : > { %v965_v38 = vsub.f32 %v951_v29, %v963_v37 }
 0x422   : > { %v968_v39 = vmul.f32 1.442695, %v965_v38 }
 0x424   : > { %1977 = vpow2.f32 %v968_v39 }
 0x429   : > { %v1976_v40 = vpop.eup %1975 }
 0x42a   : > { %v970_v41 = vsel %vm957_vm4, %v1976_v40, 0.0 }
 0x42b   : > { %971 = vadd.xlane.f32.xlu1 %v970_v41 }
 0x431   : > { %v1978_v42 = vpop.eup %1977 }
 0x432   : > { %v973_v43 = vsel %vm957_vm4, %v1978_v42, 0.0 }
 0x433   : > { %974 = vadd.xlane.f32.xlu1 %v973_v43 }
 0x4b4   : > { %v972_v49 = vpop.xlane.xlu1 %971 }
 0x4b5   : > { %1979 = vrcp.f32 %v972_v49 }
 0x4bc   : > { %v975_v50 = vpop.xlane.xlu1 %974 }
 0x4bd   : > { %1981 = vrcp.f32 %v975_v50 }
 0x4c2   : > { %v1980_v51 = vpop.eup %1979 }
 0x4c3   : > { %v978_v52 = vmul.f32 %v1980_v51, %v1976_v40 }
 0x4c5   : > { %v980_v53 = vpack.c.bf16 %v978_v52, %v978_v52 }
 0x4c7   : > { %1785 = vmatmul.mubr.msk.bf16.vlgmr.msra.gmra.mxu1 %vm957_vm4, %v980_v53 }
 0x4c8   : > { %1789 = vmatpush3.bf16.msra.mxu1 %v2413_v13  ;;  %1790 = vmatprep.mubr.msk.bf16.mxu1 %vm2129_vm1, %v2128_v8  ;;  %v1649_v8 = vld [vmem:[%s431_s22] ss:$0 sm:$0xff] }
 0x4ca   : > { %v1982_v54 = vpop.eup %1981 }
 0x4cb   : > { %v979_v55 = vmul.f32 %v1982_v54, %v1978_v42 }
 0x4cd   : > { %v981_v56 = vpack.c.bf16 %v979_v55, %v979_v55 }
 0x4cf   : > { %1791 = vmatmul.mubr.msk.bf16.vlgmr.msra.gmra.mxu1 %vm957_vm4, %v981_v56 }
 0x587   : > { %v1025_v60 = vpop.f32.mrf.mxu1 }
 0x588   : > { %v1077_v1 = vadd.f32 %v1025_v60, %v2334_v7 }
 0x589   : > { %v1786_v61 = vpop.f32.mrf.mxu1 }
 0x58b   : > { %v1028_v62 = vpop.f32.mrf.mxu1 }
 0x58d   : > { %v1787_v63 = vpop.f32.mrf.mxu1 }
 0x58f   : > { %v1071_v0 = vpop.f32.mrf.mxu1 }
 0x590   : > { %v1078_v2 = vadd.f32 %v1071_v0, %v2332_v6 }
 0x591   : > { %v1792_v3 = vpop.f32.mrf.mxu1 }
 0x592   : > { %v1079_v4 = vpack.c.bf16 %v1078_v2, %v1077_v1 }
 0x593   : > { %v1074_v5 = vpop.f32.mrf.mxu1 }
 0x594   : > { %1811 = vmatmul.mubr.bf16.vlgmr.msra.gmra.mxu0 %v1079_v4 }
 0x595   : > { %v1793_v9 = vpop.f32.mrf.mxu1 }
 0x654   : > { %v1185_v10 = vpop.f32.mrf.mxu0 }
 0x655   : > { %v1186_v11 = vadd.f32 %v1649_v8, %v1185_v10 }
 0x656   : > { %v1812_v12 = vpop.f32.mrf.mxu0 }
 0x657   : > { %v1192_v13 = vmax.f32 %v1186_v11, 0.0 }
 0x658   : > { %v1188_v16 = vpop.f32.mrf.mxu0 }
 0x659   : > { %1194 = vst [vmem:[#allocation2] sm:$0xff] %v1192_v13  ;;  %v1189_v17 = vadd.f32 %v1649_v8, %v1188_v16  ;;  %1199 = sbr.rel (%p1658_p3) target bundleno = 2231 (0x8b7), region = 76 }
 0x65a   : > { %v1813_v7 = vpop.f32.mrf.mxu0 }
 0x65b   : > { %v1193_v18 = vmax.f32 %v1189_v17, 0.0 }
 0x65d   : > { %1195 = vst [vmem:[#allocation2 + $0x8] sm:$0xff] %v1193_v18 }
 0x65e   : > { %v1203_v6 = vand.u32 127, %v524_v14  ;;  %v1204_v19 = vmul.u32 8, %v2351_v15  ;;  %v2132_v20 = vmov 0.0   ;;  %vm2133_vm5 = vmmov 0   ;;  %v1983_v22 = vld [vmem:[%s2543_s6 + $0x38] sm:$0xff]   ;;  %v1984_v23 = vld [vmem:[%s2543_s6 + $0x30] sm:$0xff]  }
 0x65f   : > { %1814 = vmatprep.subr.mxu0 %v2132_v20  ;;  %1818 = vmatprep.mubr.msk.f32.mxu0 %vm2133_vm5, %v2132_v20  ;;  %v1206_v21 = vadd.s32 1, %v2351_v15  ;;  %v1985_v24 = vld [vmem:[%s2543_s6 + $0x28] sm:$0xff]   ;;  %v1986_v25 = vld [vmem:[%s2543_s6 + $0x20] sm:$0xff]   ;;  %v1987_v26 = vld [vmem:[%s2543_s6 + $0x18] sm:$0xff]  }
 0x660   : > { %1815 = vmatpush3.msra.mxu0 %v1193_v18  ;;  %1821 = vmatprep.subr.bf16.mxu1 %v2132_v20  ;;  %vm1205_vm6 = vcmp.ge.s32.totalorder %v1203_v6, %v1204_v19  ;;  %v1988_v27 = vld [vmem:[%s2543_s6 + $0x10] sm:$0xff]   ;;  %v1989_v28 = vld [vmem:[%s2543_s6 + $0x8] sm:$0xff]   ;;  %v1990_v29 = vld [vmem:[%s2543_s6] sm:$0xff]  }
 0x661   : > { %1816 = vmatprep.subr.mxu0 %v2132_v20  ;;  %v1207_v14 = vmul.u32 8, %v1206_v21  ;;  %1822 = vmatpush3.bf16.msra.mxu1 %v1983_v22  ;;  %v1991_v30 = vld [vmem:[#allocation6 + $0x38] sm:$0xff]   ;;  %v1992_v31 = vld [vmem:[#allocation6 + $0x30] sm:$0xff]   ;;  %v1993_v32 = vld [vmem:[#allocation6 + $0x28] sm:$0xff]  }
 0x662   : > { %1817 = vmatpush3.msra.mxu0 %v1192_v13  ;;  %1823 = vmatprep.subr.bf16.mxu1 %v2132_v20  ;;  %v1994_v33 = vld [vmem:[#allocation6 + $0x20] sm:$0xff]   ;;  %v1995_v34 = vld [vmem:[#allocation6 + $0x18] sm:$0xff]   ;;  %v1996_v35 = vld [vmem:[#allocation6 + $0x10] sm:$0xff]  }
 0x663   : > { %vm1208_vm7 = vcmp.lt.s32.totalorder %v1203_v6, %v1207_v14  ;;  %1837 = vmatprep.mubr.msk.bf16.mxu1 %vm2133_vm5, %v2132_v20  ;;  %1841 = vmatprep.subr.bf16.mxu0 %v2132_v20  ;;  %v1997_v39 = vld [vmem:[#allocation6 + $0x8] sm:$0xff]   ;;  %v1998_v40 = vld [vmem:[#allocation6] sm:$0xff]   ;;  %v1660_v41 = vld [vmem:[%s2544_s7] ss:$0 sm:$0xff] }
 0x664   : > { %vm1209_vm8 = vmand %vm1205_vm6, %vm1208_vm7  ;;  %v1669_v49 = vld [vmem:[%s2546_s9] ss:$0 sm:$0xff] }
 0x665   : > { %v1210_v15 = vsel %vm1209_vm8, 0.125, %v2132_v20  ;;  %1824 = vmatpush3.bf16.msra.mxu1 %v1984_v23 }
 0x666   : > { %1819 = vmatmul.mubr.msk.f32.vlgmr.msra.gmra.mxu0 %vm449_vm2, %v1210_v15  ;;  %1825 = vmatprep.subr.bf16.mxu1 %v2132_v20 }
 0x667   : > { %1857 = vmatprep.mubr.msk.bf16.mxu0 %vm2133_vm5, %v2132_v20  ;;  %1842 = vmatpush3.bf16.msra.mxu0 %v1991_v30 }
 0x668   : > { %1843 = vmatprep.subr.bf16.mxu0 %v2132_v20 }
 0x669   : > { %1826 = vmatpush3.bf16.msra.mxu1 %v1985_v24 }
 0x66a   : > { %1827 = vmatprep.subr.bf16.mxu1 %v2132_v20 }
 0x66b   : > { %1844 = vmatpush3.bf16.msra.mxu0 %v1992_v31 }
 0x66c   : > { %1845 = vmatprep.subr.bf16.mxu0 %v2132_v20 }
 0x66d   : > { %1828 = vmatpush3.bf16.msra.mxu1 %v1986_v25 }
 0x66e   : > { %1829 = vmatprep.subr.bf16.mxu1 %v2132_v20 }
 0x66f   : > { %1846 = vmatpush3.bf16.msra.mxu0 %v1993_v32 }
 0x670   : > { %1847 = vmatprep.subr.bf16.mxu0 %v2132_v20 }
 0x671   : > { %1830 = vmatpush3.bf16.msra.mxu1 %v1987_v26 }
 0x672   : > { %1831 = vmatprep.subr.bf16.mxu1 %v2132_v20 }
 0x673   : > { %1848 = vmatpush3.bf16.msra.mxu0 %v1994_v33 }
 0x674   : > { %1849 = vmatprep.subr.bf16.mxu0 %v2132_v20 }
 0x675   : > { %1832 = vmatpush3.bf16.msra.mxu1 %v1988_v27 }
 0x676   : > { %1833 = vmatprep.subr.bf16.mxu1 %v2132_v20 }
 0x677   : > { %1850 = vmatpush3.bf16.msra.mxu0 %v1995_v34 }
 0x678   : > { %1851 = vmatprep.subr.bf16.mxu0 %v2132_v20 }
 0x679   : > { %1834 = vmatpush3.bf16.msra.mxu1 %v1989_v28 }
 0x67a   : > { %1835 = vmatprep.subr.bf16.mxu1 %v2132_v20 }
 0x67b   : > { %1852 = vmatpush3.bf16.msra.mxu0 %v1996_v35 }
 0x67c   : > { %1853 = vmatprep.subr.bf16.mxu0 %v2132_v20 }
 0x67d   : > { %1836 = vmatpush3.bf16.msra.mxu1 %v1990_v29 }
 0x67f   : > { %1854 = vmatpush3.bf16.msra.mxu0 %v1997_v39 }
 0x680   : > { %1855 = vmatprep.subr.bf16.mxu0 %v2132_v20 }
 0x683   : > { %1856 = vmatpush3.bf16.msra.mxu0 %v1998_v40 }
 0x726   : > { %v1280_v36 = vpop.f32.mrf.mxu0 }
 0x727   : > { %v1284_v37 = vpack.c.bf16 %v1280_v36, %v1280_v36 }
 0x728   : > { %v1820_v38 = vpop.f32.mrf.mxu0 }
 0x729   : > { %1838 = vmatmul.mubr.bf16.vlgmr.msra.gmra.mxu1 %v1284_v37 }
 0x7e9   : > { %v1390_v42 = vpop.f32.mrf.mxu1 }
 0x7ea   : > { %v1391_v43 = vadd.f32 %v1660_v41, %v1390_v42 }
 0x7eb   : > { %v1839_v44 = vpop.f32.mrf.mxu1 }
 0x7ec   : > { %v1396_v45 = vmax.f32 %v1391_v43, 0.0 }
 0x7ed   : > { %v1393_v46 = vpop.f32.mrf.mxu1 }
 0x7ee   : > { %v1397_v47 = vpack.c.bf16 %v1396_v45, %v1396_v45 }
 0x7ef   : > { %v1840_v48 = vpop.f32.mrf.mxu1 }
 0x7f0   : > { %1858 = vmatmul.mubr.bf16.vlgmr.msra.gmra.mxu0 %v1397_v47 }
 0x8b0   : > { %v1503_v50 = vpop.f32.mrf.mxu0 }
 0x8b1   : > { %v1504_v51 = vadd.f32 %v1669_v49, %v1503_v50 }
 0x8b2   : > { %v1859_v52 = vpop.f32.mrf.mxu0 }
 0x8b3   : > { %v1509_v53 = vmax.f32 %v1504_v51, 0.0 }
 0x8b4   : > { %v1506_v54 = vpop.f32.mrf.mxu0 }
 0x8b5   : > { %1510 = vst [vmem:[#allocation8] sm:$0x3] %v1509_v53 }
 0x8b6   : > { %v1860_v55 = vpop.f32.mrf.mxu0 }
 0x8b7 PF: > { %p1886_p7 = scmp.eq.s32.totalorder %s2209_s17, 2  ;;  %s2134_s22 = smov [#allocation8]  }
 0x8b8   : > { %s1518_s21 = sshll.u32 %s2134_s22, 4  ;;  %s1519_s21 = int_to_ptr.vmem [resolvable:$true] %s1518_s21 }
 0x8b9   : > { %s2053_s16 = scalar_lea.vmem %s1519_s21, 32  ;;  %p2060_p12 = scmp.lt.s32.totalorder %s1519_s21, %s1519_s21 }
 0x8ba   : > { %p2054_p9 = scmp.ne.s32.totalorder %s1519_s21, %s2053_s16  ;;  %p2061_p8 = scmp.lt.s32.totalorder %s2053_s16, %s2053_s16 }
 0x8bc   : > { %p2055_p10 = pnand %p2054_p9, %p1886_p7  ;;  %p2062_p2 = por %p2061_p8, %p2060_p12 }
 0x8be   : > { %p2056_p11 = pneg %p2055_p10 }
 0x8c0   : > { %p2063_p0 = pnand %p2062_p2, %p2056_p11 }
 0x8c2   : > { %2066 = shalt.err (!%p2063_p0)
}
 0x8c3   : > { %1872 = dma.vmem_to_hbm [thread:$0]  (%p1886_p7), %s1519_s21, 32, %s2547_s10, [#allocation5]  }
 0x8c4   : > { %2102 = dma.done.wait (%p1886_p7), [#allocation5], 32  }
 0x8c5   : > { %2104 = vsyncadd (%p1886_p7), [#allocation5], 4294967264 }
 0x8c6 PF: > { %s2563_s16 = sld [smem:[#allocation12_spill]]  ;;  %s2564_s13 = smov %s2111_s14 }
 0x8c7   : > { %s2565_s14 = smov %s2115_s15  ;;  %s2566_s15 = smov %s2252_s11 }
 0x8cc   : > { %p22_p1 = scmp.ge.s32.totalorder %s2563_s16, 5  }
 0x8ce   :  { %24 = sbr.rel (!%p22_p1) target bundleno = 5 (0x5), region = 118 }
 0x8d3   :  { %1531 = vsyncpa [#allocation4], 1 }
 0x8d4   :  { %1533 = vsyncpa [#allocation4 + $0x1], 1 }
 0x8d5   :  { %1534 = vsyncpa [#allocation7], 1 }
 0x8d6   :  { %1535 = vsyncpa [#allocation5], 1 }
 0x8d7   :  { %1537 = vsyncpa [#allocation5 + $0x1], 1 }

</bundles_post_ra>
